<compile_context>
chip_gen: v5e
topology: v5e:2x2
jax: 0.10.0
libtpu: 0.0.40
codegen_flags: <defaults>
</compile_context>

<pallas_src>
import jax
import jax.numpy as jnp
from jax.experimental import pallas as pl
from jax.experimental.pallas import tpu as pltpu

_LANES = 128


def _round_up(a, b):
    return ((a + b - 1) // b) * b


def _per_chip_config():
    """Returns (block_bytes, vmem_limit_bytes) tuned per TPU generation."""
    try:
        kind = jax.devices()[0].device_kind.lower()
    except Exception:
        kind = ""
    if "v7" in kind:
        # 3.2 TB/s HBM -> per-step overhead dominates; 8 MiB blocks, but only
        # 64 MiB VMEM per TensorCore, so keep the scoped limit modest.
        return 8 << 20, 48 << 20
    if "v6" in kind:
        # 128 MiB physical VMEM -> plenty of room for 8 MiB blocks.
        return 8 << 20, 64 << 20
    # v5e / unknown: 4 MiB blocks already sit on the ~85% roofline plateau.
    return 4 << 20, 32 << 20


def _drelu_kernel(slopes_ref, x_ref, o_ref):
    # slopes_ref: SMEM f32 [2] = (slope_p, -slope_n)   (pre-negated on host)
    x = x_ref[...]
    sp = slopes_ref[0].astype(x.dtype)
    sn = slopes_ref[1].astype(x.dtype)
    # out = slope_p*relu(x) + slope_n*relu(-x) = where(x>=0, sp, -sn) * x
    o_ref[...] = (jnp.where(x >= 0, sp, sn) * x).astype(o_ref.dtype)


def drelu(x, slope_p, slope_n, *, block_bytes=None, min_pallas_bytes=4 << 20):
    """Apply DReLU elementwise. x may be any shape (e.g. NCHW)."""
    orig_shape = x.shape
    dtype = x.dtype
    n = x.size
    itemsize = jnp.dtype(dtype).itemsize

    # Sublane packing for the dtype: 8 (f32), 16 (bf16), 32 (int8/fp8).
    pack = max(8, 8 * (4 // max(itemsize, 1)))
    chunk = _LANES * pack

    # Fusion escape hatch + ragged path: for small activations, or whenever
    # numel is not a multiple of the native tile width, a standalone Pallas
    # call would force a dedicated HBM round trip (and, for ragged sizes,
    # pad/slice copies).  Plain jnp lets XLA fuse with the producer instead.
    if n == 0 or (n % chunk) != 0 or (n * itemsize) < min_pallas_bytes:
        sp = jnp.asarray(slope_p, dtype)
        sn = jnp.asarray(slope_n, dtype)
        return sp * jnp.maximum(x, 0) + sn * jnp.maximum(-x, 0)

    # Zero-copy lane-dense view.
    rows = n // _LANES                       # multiple of `pack`
    x2d = jnp.ravel(x).reshape(rows, _LANES)

    # Block sizing in bytes (per-generation default), converted to rows.
    if block_bytes is None:
        block_bytes, vmem_limit = _per_chip_config()
    else:
        _, vmem_limit = _per_chip_config()
    tile_rows = max(1024, block_bytes // (_LANES * itemsize))
    tile_rows = _round_up(tile_rows, pack)

    tr = min(tile_rows, rows)
    # Keep the grid at >= ~8 steps when the tensor is big enough so the
    # in/out DMAs pipeline and both v7x TensorCores get work, while keeping
    # each tile at >= 1024 rows (512 KiB f32) to amortize per-step overhead.
    target_steps = 8
    min_tile_rows = 1024
    if rows > min_tile_rows:
        step_rows = _round_up(pl.cdiv(rows, target_steps), pack)
        tr = min(tr, max(step_rows, min_tile_rows))
    tr = max(tr, pack)

    grid = (pl.cdiv(rows, tr),)

    # Learnable scalars in f32 SMEM; slope_n pre-negated (one fewer scalar op
    # per grid step in the kernel).
    slopes = jnp.array([slope_p, -slope_n], dtype=jnp.float32)

    out2d = pl.pallas_call(
        _drelu_kernel,
        out_shape=jax.ShapeDtypeStruct((rows, _LANES), dtype),
        grid_spec=pltpu.PrefetchScalarGridSpec(
            num_scalar_prefetch=0,
            grid=grid,
            in_specs=[
                pl.BlockSpec(memory_space=pltpu.SMEM),           # slopes (f32)
                pl.BlockSpec((tr, _LANES), lambda i: (i, 0)),    # x tile
            ],
            out_specs=pl.BlockSpec((tr, _LANES), lambda i: (i, 0)),
        ),
        compiler_params=pltpu.CompilerParams(
            dimension_semantics=("parallel",),
            vmem_limit_bytes=vmem_limit),
        cost_estimate=pl.CostEstimate(
            flops=n, transcendentals=0, bytes_accessed=2 * n * itemsize),
    )(slopes, x2d)

    return out2d.reshape(orig_shape)


def _ref(x, slope_p, slope_n):
    return (slope_p * jnp.maximum(x, 0).astype(jnp.float32)
            + slope_n * jnp.maximum(-x, 0).astype(jnp.float32)).astype(x.dtype)


if __name__ == "__main__":
    key = jax.random.PRNGKey(0)

    # DReLU.__init__ defaults are slope_p=1.0, slope_n=0.0 — use off-default
    # values so both branches are exercised.
    slope_p = 1.25
    slope_n = -0.5

    # 1) NCHW input (as used inside the ResNet block), forced through the
    #    Pallas path (min_pallas_bytes=0 disables the fusion escape hatch).
    x = jax.random.normal(key, (2, 4, 16, 16), dtype=jnp.float32)
    out = jax.block_until_ready(drelu(x, slope_p, slope_n, min_pallas_bytes=0))
    assert out.shape == x.shape and out.dtype == x.dtype
    assert jnp.allclose(out, _ref(x, slope_p, slope_n), atol=1e-6, rtol=1e-6)

    # 2) Larger aligned input -> multi-step grid (pipelined, megacore-shardable).
    x_big = jax.random.normal(jax.random.PRNGKey(2), (16, 16, 32, 32),
                              dtype=jnp.float32)
    out_big = jax.block_until_ready(
        drelu(x_big, slope_p, slope_n, min_pallas_bytes=0))
    assert jnp.allclose(out_big, _ref(x_big, slope_p, slope_n),
                        atol=1e-6, rtol=1e-6)

    # 3) Ragged / tiny input -> fusion escape hatch (plain jnp, no pad/slice).
    x_rag = jax.random.normal(jax.random.PRNGKey(1), (3, 5, 7),
                              dtype=jnp.float32)
    out_rag = jax.block_until_ready(drelu(x_rag, slope_p, slope_n))
    assert out_rag.shape == x_rag.shape and out_rag.dtype == x_rag.dtype
    assert jnp.allclose(out_rag, _ref(x_rag, slope_p, slope_n),
                        atol=1e-6, rtol=1e-6)

    print("KERNEL_OK")
</pallas_src>

<mosaic_0001>
module attributes {stable_mosaic.version = 11 : i64} {
  func.func @_drelu_kernel(%arg0: i32, %arg1: memref<2xf32, #tpu.memory_space<smem>>, %arg2: memref<16x128xf32, #tpu.memory_space<vmem>>, %arg3: memref<16x128xf32, #tpu.memory_space<vmem>>) attributes {dimension_semantics = [#tpu.dimension_semantics<parallel>], iteration_bounds = array<i64: 1>, scalar_prefetch = 0 : i64, scratch_operands = 0 : i64, tpu.core_type = #tpu.core_type<tc>, window_params = [{transform_indices = @transform_0, window_bounds = array<i64: 2>}, {transform_indices = @transform_1, window_bounds = array<i64: 16, 128>}, {transform_indices = @transform_2, window_bounds = array<i64: 16, 128>}]} {
    %c0 = arith.constant 0 : index
    %c0_0 = arith.constant 0 : index
    %0 = vector.load %arg2[%c0, %c0_0] : memref<16x128xf32, #tpu.memory_space<vmem>>, vector<16x128xf32>
    %c0_1 = arith.constant 0 : index
    %1 = memref.load %arg1[%c0_1] : memref<2xf32, #tpu.memory_space<smem>>
    %c1 = arith.constant 1 : index
    %2 = memref.load %arg1[%c1] : memref<2xf32, #tpu.memory_space<smem>>
    %cst = arith.constant 0.000000e+00 : f32
    %3 = vector.broadcast %cst : f32 to vector<16x128xf32>
    %4 = arith.cmpf oge, %0, %3 : vector<16x128xf32>
    %5 = vector.broadcast %1 : f32 to vector<16x128xf32>
    %6 = vector.broadcast %2 : f32 to vector<16x128xf32>
    %7 = arith.select %4, %5, %6 : vector<16x128xi1>, vector<16x128xf32>
    %8 = arith.mulf %7, %0 : vector<16x128xf32>
    %c0_2 = arith.constant 0 : index
    %c0_3 = arith.constant 0 : index
    %9 = vector.load %arg3[%c0_2, %c0_3] : memref<16x128xf32, #tpu.memory_space<vmem>>, vector<16x128xf32>
    tpu.vector_store %arg3[%c0_2, %c0_3], %8 {strides = array<i32>} : memref<16x128xf32, #tpu.memory_space<vmem>>, vector<16x128xf32>,
    return
  }
  func.func @transform_0(%arg0: i32) -> i32 {
    %c0_i32 = arith.constant 0 : i32
    %c0_i32_0 = arith.constant 0 : i32
    return %c0_i32 : i32
  }
  func.func @transform_1(%arg0: i32) -> (i32, i32) {
    %c0_i32 = arith.constant 0 : i32
    %c0_i32_0 = arith.constant 0 : i32
    return %arg0, %c0_i32 : i32, i32
  }
  func.func @transform_2(%arg0: i32) -> (i32, i32) {
    %c0_i32 = arith.constant 0 : i32
    %c0_i32_0 = arith.constant 0 : i32
    return %arg0, %c0_i32 : i32, i32
  }
}

</mosaic_0001>

<bundles_post_ra>
// kernel: tpu_custom_call.1
= control target key start
LH: loop header
LB: loop body
LE: loop exit
PB: predicated region body
PF: predicated region fallthrough
CT: control target
= control target key end

     0   :  { %7 = vsyncpa [#allocation5], 0  ;;  %s182_s0 = inlined_call_operand.hbm [shape: f32[2], index: 0, kind: input, shape index: {}]   ;;  %s183_s1 = inlined_call_operand.hbm [shape: f32[16,128], index: 1, kind: input, shape index: {}]   ;;  %s184_s2 = inlined_call_operand.hbm [shape: f32[16,128], index: 2, kind: output, shape index: {}]  }
   0x1   :  { %8 = vsyncpa [#allocation3], 0 }
   0x2   :  { %9 = vsyncpa [#allocation4], 0  ;;  %s15_s11 = sshll.u32 %s182_s0, 4  ;;  %s23_s14 = sshll.u32 %s183_s1, 4  ;;  %s16_s11 = int_to_ptr.hbm [resolvable:$true] %s15_s11  ;;  %s24_s14 = int_to_ptr.hbm [resolvable:$true] %s23_s14 }
   0x3   :  { %s147_s15 = smov [#allocation2]   ;;  %s148_s16 = smov [#allocation6]  }
   0x4   :  { %18 = dma.hbm_to_smem %s16_s11, 16, %s147_s15, [#allocation5]  }
   0x5   :  { %s25_s17 = sshll.u32 %s148_s16, 4  ;;  %s149_s18 = smov 128   ;;  %s26_s17 = int_to_ptr.vmem [resolvable:$true] %s25_s17 }
   0x6   :  { %s150_s19 = smov 8  }
   0x7   :  { %31 = dma.hbm_to_vmem [thread:$0]  %s24_s14, 256, %s26_s17, [#allocation3], %s149_s18, %s149_s18, %s150_s19  }
   0x8   :  { %141 = dma.done.wait [#allocation5], 16  }
   0x9   :  { %142 = vsyncadd [#allocation5], 4294967280 }
   0xa   :  { %143 = dma.done.wait [#allocation3], 256  }
   0xb   :  { %144 = vsyncadd [#allocation3], 4294967040 }
   0xc   :  { %40 = sfence }
   0xd   :  { %s43_s0 = sld [smem:[#allocation2]]  ;;  %v41_v0 = vld [vmem:[#allocation6] sm:$0xff]  ;;  %v42_v1 = vld [vmem:[#allocation6 + $0x8] sm:$0xff]  ;;  %s151_s1 = smov [#allocation7]  }
   0xe   :  { %s75_s20 = sld [smem:[#allocation2 + $0x1]]  ;;  %vm45_vm0 = vcmp.ge.f32.partialorder %v41_v0, 0.0  ;;  %vm46_vm1 = vcmp.ge.f32.partialorder %v42_v1, 0.0  ;;  %s59_s21 = sshll.u32 %s151_s1, 4  ;;  %s60_s21 = int_to_ptr.vmem [resolvable:$true] %s59_s21 }
   0xf   :  { %s61_s24 = sshll.u32 %s184_s2, 4  ;;  %s62_s24 = int_to_ptr.hbm [resolvable:$true] %s61_s24 }
  0x13   :  { %v47_v2 = vstv %s43_s0 }
  0x14   :  { %v48_v3 = vstv %s75_s20 }
  0x15   :  { %v49_v4 = vsel %vm45_vm0, %v47_v2, %v48_v3  ;;  %v50_v5 = vsel %vm46_vm1, %v47_v2, %v48_v3 }
  0x16   :  { %v51_v6 = vmul.f32 %v49_v4, %v41_v0  ;;  %v52_v7 = vmul.f32 %v50_v5, %v42_v1 }
  0x18   :  { %53 = vst [vmem:[#allocation7] sm:$0xff] %v51_v6 }
  0x19   :  { %54 = vst [vmem:[#allocation7 + $0x8] sm:$0xff] %v52_v7 }
  0x1a   :  { %67 = dma.vmem_to_hbm [thread:$0]  %s60_s21, 256, %s62_s24, [#allocation4], %s149_s18, %s149_s18, %s150_s19  }
  0x1b   :  { %145 = dma.done.wait [#allocation4], 256  }
  0x1c   :  { %146 = vsyncadd [#allocation4], 4294967040 }
  0x1d   :  { %72 = vsyncpa [#allocation3], 1 }
  0x1e   :  { %73 = vsyncpa [#allocation4], 1 }
  0x1f   :  { %74 = vsyncpa [#allocation5], 1 }

</bundles_post_ra>
